<compile_context>
chip_gen: v7x
topology: tpu7x:2x2x1
jax: 0.10.0
libtpu: 0.0.40
codegen_flags: <defaults>
</compile_context>

<pallas_src>
import functools

import jax
import jax.numpy as jnp
from jax import lax
from jax.experimental import pallas as pl
from jax.experimental.pallas import tpu as pltpu


def _round_up(x, m):
    return (x + m - 1) // m * m


def nas_model_kernel(heads_ref, rels_ref, tails_ref,     # SMEM (scalar prefetch), [B_pad] i32
                     h_tab_ref, r_tab_ref, t_tab_ref,    # VMEM fused tables [E,D]/[R,D]/[E,D]
                     b1_ref, w2_ref,                     # VMEM [1, D]
                     b2_ref,                             # SMEM [1, 1]
                     out_ref,                            # VMEM [1, TB] (lane-dense scores)
                     x_scratch):                         # VMEM [TB, D]
    TB = out_ref.shape[1]
    E = h_tab_ref.shape[0]
    R = r_tab_ref.shape[0]
    b0 = pl.program_id(0) * TB

    def gather_row(i, carry):
        # Scalar-path index reads; clamp defensively (OOB VMEM reads are unchecked).
        h_idx = jnp.clip(heads_ref[b0 + i], 0, E - 1)
        r_idx = jnp.clip(rels_ref[b0 + i], 0, R - 1)
        t_idx = jnp.clip(tails_ref[b0 + i], 0, E - 1)
        x_scratch[pl.ds(i, 1), :] = (h_tab_ref[pl.ds(h_idx, 1), :]
                                     + r_tab_ref[pl.ds(r_idx, 1), :]
                                     + t_tab_ref[pl.ds(t_idx, 1), :])
        return carry

    lax.fori_loop(0, TB, gather_row, 0)

    # ReLU(x + b1), then D->1 projection on the VPU + lane reduce (no MXU).
    z = jnp.maximum(x_scratch[...] + b1_ref[...], 0.0)             # [TB, D]
    scores = jnp.sum(z * w2_ref[...], axis=-1) + b2_ref[0, 0]      # [TB]
    out_ref[...] = scores.reshape(1, TB)                           # lane-dense store


@functools.partial(jax.jit, static_argnames=("block_b",))
def nas_model_forward(heads, relations, tails, params, *, block_b=128):
    """heads/relations/tails: int [B].  Returns f32 [B, 1]."""
    ent_tab, rel_tab, w1, b1, w2, b2 = params
    E, D = ent_tab.shape
    R = rel_tab.shape[0]
    B = heads.shape[0]

    # ---- fold W1 into the tables once (XLA side): (onehot@T)@W == onehot@(T@W)
    hi = jax.lax.Precision.HIGHEST
    h_tab = jnp.dot(ent_tab, w1[0:D, :], precision=hi)        # [E, D]
    r_tab = jnp.dot(rel_tab, w1[D:2 * D, :], precision=hi)    # [R, D]
    t_tab = jnp.dot(ent_tab, w1[2 * D:, :], precision=hi)     # [E, D]
    b1_row = b1.reshape(1, D)
    w2_row = w2.reshape(1, D)
    b2_s = b2.reshape(1, 1)

    # ---- batch tiling (TB multiple of 8; lane-dense once TB reaches 128)
    TB = max(8, min(_round_up(block_b, 8), _round_up(B, 8)))
    B_pad = _round_up(B, TB)
    num_tiles = B_pad // TB

    def prep_idx(x):
        x = x.astype(jnp.int32).reshape(B)
        if B_pad != B:
            x = jnp.pad(x, (0, B_pad - B))   # pad with index 0 (valid row)
        return x

    heads_p = prep_idx(heads)
    rels_p = prep_idx(relations)
    tails_p = prep_idx(tails)

    grid_spec = pltpu.PrefetchScalarGridSpec(
        num_scalar_prefetch=3,              # heads / relations / tails -> SMEM
        grid=(num_tiles,),
        in_specs=[
            pl.BlockSpec((E, D), lambda t, *_: (0, 0)),            # fused head table (resident)
            pl.BlockSpec((R, D), lambda t, *_: (0, 0)),            # fused relation table
            pl.BlockSpec((E, D), lambda t, *_: (0, 0)),            # fused tail table
            pl.BlockSpec((1, D), lambda t, *_: (0, 0)),            # b1
            pl.BlockSpec((1, D), lambda t, *_: (0, 0)),            # w2 as a row
            pl.BlockSpec(memory_space=pltpu.MemorySpace.SMEM),     # b2 scalar
        ],
        out_specs=pl.BlockSpec((1, TB), lambda t, *_: (t, 0)),
        scratch_shapes=[pltpu.VMEM((TB, D), jnp.float32)],
    )

    out = pl.pallas_call(
        nas_model_kernel,
        out_shape=jax.ShapeDtypeStruct((num_tiles, TB), jnp.float32),
        grid_spec=grid_spec,
        compiler_params=pltpu.CompilerParams(
            dimension_semantics=("parallel",)),   # v7x: split batch tiles over 2 TCs
    )(heads_p, rels_p, tails_p, h_tab, r_tab, t_tab, b1_row, w2_row, b2_s)

    return out.reshape(B_pad, 1)[:B]


def init_params(key, num_entities, num_relations, embedding_dim):
    D = embedding_dim
    k_ent, k_rel, k_w1, k_b1, k_w2, k_b2 = jax.random.split(key, 6)
    # nn.Embedding default init: N(0, 1)
    ent_tab = jax.random.normal(k_ent, (num_entities, D), jnp.float32)
    rel_tab = jax.random.normal(k_rel, (num_relations, D), jnp.float32)
    # nn.Linear default init: U(-1/sqrt(fan_in), 1/sqrt(fan_in)); stored transposed.
    lim1 = 1.0 / jnp.sqrt(3.0 * D)
    w1 = jax.random.uniform(k_w1, (3 * D, D), jnp.float32, -lim1, lim1)
    b1 = jax.random.uniform(k_b1, (1, D), jnp.float32, -lim1, lim1)
    lim2 = 1.0 / jnp.sqrt(1.0 * D)
    w2 = jax.random.uniform(k_w2, (D, 1), jnp.float32, -lim2, lim2)
    b2 = jax.random.uniform(k_b2, (1, 1), jnp.float32, -lim2, lim2)
    return ent_tab, rel_tab, w1, b1, w2, b2


def nas_model_reference(heads, relations, tails, params):
    """Pure-JAX reference mirroring the PyTorch forward."""
    ent_tab, rel_tab, w1, b1, w2, b2 = params
    h = ent_tab[heads]
    r = rel_tab[relations]
    t = ent_tab[tails]
    x = jnp.concatenate([h, r, t], axis=1)
    hi = jax.lax.Precision.HIGHEST
    z = jnp.maximum(jnp.dot(x, w1, precision=hi) + b1, 0.0)
    return jnp.dot(z, w2, precision=hi) + b2


if __name__ == "__main__":
    num_entities = 16
    num_relations = 4
    embedding_dim = 32
    batch = 8

    key = jax.random.PRNGKey(0)
    k_params, k_h, k_r, k_t = jax.random.split(key, 4)
    params = init_params(k_params, num_entities, num_relations, embedding_dim)

    heads = jax.random.randint(k_h, (batch,), 0, num_entities, jnp.int32)
    relations = jax.random.randint(k_r, (batch,), 0, num_relations, jnp.int32)
    tails = jax.random.randint(k_t, (batch,), 0, num_entities, jnp.int32)

    out = nas_model_forward(heads, relations, tails, params)
    out = jax.block_until_ready(out)

    ref = nas_model_reference(heads, relations, tails, params)
    assert out.shape == (batch, 1), out.shape
    assert jnp.allclose(out, ref, atol=1e-4, rtol=1e-4), (out, ref)

    print("KERNEL_OK")
</pallas_src>

<mosaic_0001>
module attributes {stable_mosaic.version = 11 : i64} {
  func.func @nas_model_kernel(%arg0: i32, %arg1: memref<8xi32, #tpu.memory_space<smem>>, %arg2: memref<8xi32, #tpu.memory_space<smem>>, %arg3: memref<8xi32, #tpu.memory_space<smem>>, %arg4: memref<16x32xf32, #tpu.memory_space<vmem>>, %arg5: memref<4x32xf32, #tpu.memory_space<vmem>>, %arg6: memref<16x32xf32, #tpu.memory_space<vmem>>, %arg7: memref<1x32xf32, #tpu.memory_space<vmem>>, %arg8: memref<1x32xf32, #tpu.memory_space<vmem>>, %arg9: memref<1x1xf32, #tpu.memory_space<smem>>, %arg10: memref<1x8xf32, #tpu.memory_space<vmem>>, %arg11: memref<8x32xf32, #tpu.memory_space<vmem>>) attributes {dimension_semantics = [#tpu.dimension_semantics<parallel>], iteration_bounds = array<i64: 1>, scalar_prefetch = 3 : i64, scratch_operands = 1 : i64, tpu.core_type = #tpu.core_type<tc>, window_params = [{pipeline_mode = #tpu.pipeline_mode<synchronous>, transform_indices = @transform_0, window_bounds = array<i64: 16, 32>}, {pipeline_mode = #tpu.pipeline_mode<synchronous>, transform_indices = @transform_1, window_bounds = array<i64: 4, 32>}, {pipeline_mode = #tpu.pipeline_mode<synchronous>, transform_indices = @transform_2, window_bounds = array<i64: 16, 32>}, {pipeline_mode = #tpu.pipeline_mode<synchronous>, transform_indices = @transform_3, window_bounds = array<i64: 1, 32>}, {pipeline_mode = #tpu.pipeline_mode<synchronous>, transform_indices = @transform_4, window_bounds = array<i64: 1, 32>}, {transform_indices = @transform_5, window_bounds = array<i64: 1, 1>}, {transform_indices = @transform_6, window_bounds = array<i64: 1, 8>}]} {
    %c8_i32 = arith.constant 8 : i32
    %0 = arith.muli %arg0, %c8_i32 : i32
    %c0_i32 = arith.constant 0 : i32
    %c8_i32_0 = arith.constant 8 : i32
    %1 = arith.addi %c0_i32, %c8_i32_0 : i32
    %c1_i32 = arith.constant 1 : i32
    scf.for %arg12 = %c0_i32 to %1 step %c1_i32  : i32 {
      %17 = arith.addi %0, %arg12 : i32
      %18 = arith.index_cast %17 : i32 to index
      %19 = memref.load %arg1[%18] : memref<8xi32, #tpu.memory_space<smem>>
      %c0_i32_12 = arith.constant 0 : i32
      %c15_i32 = arith.constant 15 : i32
      %20 = arith.maxsi %c0_i32_12, %19 : i32
      %21 = arith.minsi %c15_i32, %20 : i32
      %22 = arith.addi %0, %arg12 : i32
      %23 = arith.index_cast %22 : i32 to index
      %24 = memref.load %arg2[%23] : memref<8xi32, #tpu.memory_space<smem>>
      %c0_i32_13 = arith.constant 0 : i32
      %c3_i32 = arith.constant 3 : i32
      %25 = arith.maxsi %c0_i32_13, %24 : i32
      %26 = arith.minsi %c3_i32, %25 : i32
      %27 = arith.addi %0, %arg12 : i32
      %28 = arith.index_cast %27 : i32 to index
      %29 = memref.load %arg3[%28] : memref<8xi32, #tpu.memory_space<smem>>
      %c0_i32_14 = arith.constant 0 : i32
      %c15_i32_15 = arith.constant 15 : i32
      %30 = arith.maxsi %c0_i32_14, %29 : i32
      %31 = arith.minsi %c15_i32_15, %30 : i32
      %32 = arith.index_cast %21 : i32 to index
      %c0_16 = arith.constant 0 : index
      %33 = vector.load %arg4[%32, %c0_16] : memref<16x32xf32, #tpu.memory_space<vmem>>, vector<1x32xf32>
      %34 = arith.index_cast %26 : i32 to index
      %c0_17 = arith.constant 0 : index
      %35 = vector.load %arg5[%34, %c0_17] : memref<4x32xf32, #tpu.memory_space<vmem>>, vector<1x32xf32>
      %36 = arith.addf %33, %35 : vector<1x32xf32>
      %37 = arith.index_cast %31 : i32 to index
      %c0_18 = arith.constant 0 : index
      %38 = vector.load %arg6[%37, %c0_18] : memref<16x32xf32, #tpu.memory_space<vmem>>, vector<1x32xf32>
      %39 = arith.addf %36, %38 : vector<1x32xf32>
      %40 = arith.index_cast %arg12 : i32 to index
      %c0_19 = arith.constant 0 : index
      %41 = vector.load %arg11[%40, %c0_19] : memref<8x32xf32, #tpu.memory_space<vmem>>, vector<1x32xf32>
      tpu.vector_store %arg11[%40, %c0_19], %39 {strides = array<i32>} : memref<8x32xf32, #tpu.memory_space<vmem>>, vector<1x32xf32>,
    }
    %c8_i32_1 = arith.constant 8 : i32
    %c0 = arith.constant 0 : index
    %c0_2 = arith.constant 0 : index
    %2 = vector.load %arg11[%c0, %c0_2] : memref<8x32xf32, #tpu.memory_space<vmem>>, vector<8x32xf32>
    %c0_3 = arith.constant 0 : index
    %c0_4 = arith.constant 0 : index
    %3 = vector.load %arg7[%c0_3, %c0_4] : memref<1x32xf32, #tpu.memory_space<vmem>>, vector<1x32xf32>
    %4 = vector.broadcast %3 : vector<1x32xf32> to vector<8x32xf32>
    %5 = arith.addf %2, %4 : vector<8x32xf32>
    %cst = arith.constant 0.000000e+00 : f32
    %6 = vector.broadcast %cst : f32 to vector<8x32xf32>
    %7 = arith.maximumf %5, %6 : vector<8x32xf32>
    %c0_5 = arith.constant 0 : index
    %c0_6 = arith.constant 0 : index
    %8 = vector.load %arg8[%c0_5, %c0_6] : memref<1x32xf32, #tpu.memory_space<vmem>>, vector<1x32xf32>
    %9 = vector.broadcast %8 : vector<1x32xf32> to vector<8x32xf32>
    %10 = arith.mulf %7, %9 : vector<8x32xf32>
    %cst_7 = arith.constant dense<0.000000e+00> : vector<8xf32>
    %11 = vector.multi_reduction <add>, %10, %cst_7 [1] : vector<8x32xf32> to vector<8xf32>
    %c0_8 = arith.constant 0 : index
    %c0_9 = arith.constant 0 : index
    %12 = memref.load %arg9[%c0_8, %c0_9] : memref<1x1xf32, #tpu.memory_space<smem>>
    %13 = vector.broadcast %12 : f32 to vector<8xf32>
    %14 = arith.addf %11, %13 : vector<8xf32>
    %15 = vector.shape_cast %14 : vector<8xf32> to vector<1x8xf32>
    %c0_10 = arith.constant 0 : index
    %c0_11 = arith.constant 0 : index
    %16 = vector.load %arg10[%c0_10, %c0_11] : memref<1x8xf32, #tpu.memory_space<vmem>>, vector<1x8xf32>
    tpu.vector_store %arg10[%c0_10, %c0_11], %15 {strides = array<i32>} : memref<1x8xf32, #tpu.memory_space<vmem>>, vector<1x8xf32>,
    return
  }
  func.func @transform_0(%arg0: i32, %arg1: memref<8xi32, #tpu.memory_space<smem>>, %arg2: memref<8xi32, #tpu.memory_space<smem>>, %arg3: memref<8xi32, #tpu.memory_space<smem>>) -> (i32, i32) {
    %c0_i32 = arith.constant 0 : i32
    %c0_i32_0 = arith.constant 0 : i32
    %c0_i32_1 = arith.constant 0 : i32
    return %c0_i32, %c0_i32_0 : i32, i32
  }
  func.func @transform_1(%arg0: i32, %arg1: memref<8xi32, #tpu.memory_space<smem>>, %arg2: memref<8xi32, #tpu.memory_space<smem>>, %arg3: memref<8xi32, #tpu.memory_space<smem>>) -> (i32, i32) {
    %c0_i32 = arith.constant 0 : i32
    %c0_i32_0 = arith.constant 0 : i32
    %c0_i32_1 = arith.constant 0 : i32
    return %c0_i32, %c0_i32_0 : i32, i32
  }
  func.func @transform_2(%arg0: i32, %arg1: memref<8xi32, #tpu.memory_space<smem>>, %arg2: memref<8xi32, #tpu.memory_space<smem>>, %arg3: memref<8xi32, #tpu.memory_space<smem>>) -> (i32, i32) {
    %c0_i32 = arith.constant 0 : i32
    %c0_i32_0 = arith.constant 0 : i32
    %c0_i32_1 = arith.constant 0 : i32
    return %c0_i32, %c0_i32_0 : i32, i32
  }
  func.func @transform_3(%arg0: i32, %arg1: memref<8xi32, #tpu.memory_space<smem>>, %arg2: memref<8xi32, #tpu.memory_space<smem>>, %arg3: memref<8xi32, #tpu.memory_space<smem>>) -> (i32, i32) {
    %c0_i32 = arith.constant 0 : i32
    %c0_i32_0 = arith.constant 0 : i32
    %c0_i32_1 = arith.constant 0 : i32
    return %c0_i32, %c0_i32_0 : i32, i32
  }
  func.func @transform_4(%arg0: i32, %arg1: memref<8xi32, #tpu.memory_space<smem>>, %arg2: memref<8xi32, #tpu.memory_space<smem>>, %arg3: memref<8xi32, #tpu.memory_space<smem>>) -> (i32, i32) {
    %c0_i32 = arith.constant 0 : i32
    %c0_i32_0 = arith.constant 0 : i32
    %c0_i32_1 = arith.constant 0 : i32
    return %c0_i32, %c0_i32_0 : i32, i32
  }
  func.func @transform_5(%arg0: i32, %arg1: memref<8xi32, #tpu.memory_space<smem>>, %arg2: memref<8xi32, #tpu.memory_space<smem>>, %arg3: memref<8xi32, #tpu.memory_space<smem>>) -> (i32, i32) {
    %c0_i32 = arith.constant 0 : i32
    %c0_i32_0 = arith.constant 0 : i32
    %c0_i32_1 = arith.constant 0 : i32
    return %c0_i32, %c0_i32_0 : i32, i32
  }
  func.func @transform_6(%arg0: i32, %arg1: memref<8xi32, #tpu.memory_space<smem>>, %arg2: memref<8xi32, #tpu.memory_space<smem>>, %arg3: memref<8xi32, #tpu.memory_space<smem>>) -> (i32, i32) {
    %c0_i32 = arith.constant 0 : i32
    %c0_i32_0 = arith.constant 0 : i32
    return %arg0, %c0_i32 : i32, i32
  }
}

</mosaic_0001>

<bundles_post_ra>
// kernel: nas_model_forward.1
= control target key start
LH: loop header
LB: loop body
LE: loop exit
PB: predicated region body
PF: predicated region fallthrough
CT: control target
= control target key end

     0   :  { %s344_s0 = inlined_call_operand.vmem [shape: s32[8], index: 0, kind: input, shape index: {}]   ;;  %s345_s3 = inlined_call_operand.vmem [shape: f32[16,32], index: 3, kind: input, shape index: {}]   ;;  %s346_s4 = inlined_call_operand.vmem [shape: f32[4,32], index: 4, kind: input, shape index: {}]   ;;  %s347_s5 = inlined_call_operand.vmem [shape: f32[16,32], index: 5, kind: input, shape index: {}]   ;;  %s348_s6 = inlined_call_operand.vmem [shape: f32[1,32], index: 6, kind: input, shape index: {}]   ;;  %s349_s7 = inlined_call_operand.vmem [shape: f32[1,32], index: 7, kind: input, shape index: {}]   ;;  %s350_s9 = inlined_call_operand.hbm [shape: f32[1,8], index: 9, kind: output, shape index: {}]   ;;  %s351_s1 = inlined_call_operand.vmem [shape: s32[8], index: 1, kind: input, shape index: {}]   ;;  %s352_s2 = inlined_call_operand.vmem [shape: s32[8], index: 2, kind: input, shape index: {}]   ;;  %s353_s8 = inlined_call_operand.<no memory space> [shape: f32[1,1], index: 8, kind: input, shape index: {}]  }
   0x1   :  { %s14_s11 = sshll.u32 %s344_s0, 4  ;;  %s18_s14 = sshll.u32 %s351_s1, 4  ;;  %s15_s11 = int_to_ptr.vmem [resolvable:$true] %s14_s11  ;;  %s19_s14 = int_to_ptr.vmem [resolvable:$true] %s18_s14 }
   0x2   :  { %s169_s15 = scalar_lea.vmem %s15_s11, 16  ;;  %p174_p1 = scmp.lt.s32.totalorder %s15_s11, %s15_s11 }
   0x3   :  { %p170_p0 = scmp.ne.s32.totalorder %s15_s11, %s169_s15  ;;  %p175_p2 = scmp.lt.s32.totalorder %s169_s15, %s169_s15 }
   0x5   :  { %p176_p3 = por %p175_p2, %p174_p1 }
   0x7   :  { %p177_p4 = pnand %p176_p3, %p170_p0 }
   0x9   :  { %180 = shalt.err (!%p177_p4)  }
   0xa   :  { %s239_s16 = smov [#allocation4]   ;;  %s181_s17 = scalar_lea.vmem %s19_s14, 16 }
   0xb   :  { %17 = dma.vmem_to_smem %s15_s11, 16, %s239_s16, [#allocation3] }
   0xc   :  { %p182_p5 = scmp.ne.s32.totalorder %s19_s14, %s181_s17  ;;  %p186_p6 = scmp.lt.s32.totalorder %s19_s14, %s19_s14 }
   0xd   :  { %p187_p7 = scmp.lt.s32.totalorder %s181_s17, %s181_s17 }
   0xf   :  { %p188_p8 = por %p187_p7, %p186_p6 }
  0x11   :  { %p189_p9 = pnand %p188_p8, %p182_p5 }
  0x13   :  { %192 = shalt.err (!%p189_p9)  }
  0x14   :  { %s240_s0 = smov [#allocation5]   ;;  %s22_s19 = sshll.u32 %s352_s2, 4  ;;  %s23_s19 = int_to_ptr.vmem [resolvable:$true] %s22_s19 }
  0x15   :  { %21 = dma.vmem_to_smem %s19_s14, 16, %s240_s0, [#allocation3] }
  0x16   :  { %26 = sst [smem:[#allocation7]] %s353_s8  ;;  %s193_s22 = scalar_lea.vmem %s23_s19, 16 }
  0x17   :  { %p194_p10 = scmp.ne.s32.totalorder %s23_s19, %s193_s22  ;;  %p198_p11 = scmp.lt.s32.totalorder %s23_s19, %s23_s19 }
  0x18   :  { %p199_p12 = scmp.lt.s32.totalorder %s193_s22, %s193_s22 }
  0x1a   :  { %p200_p13 = por %p199_p12, %p198_p11 }
  0x1c   :  { %p201_p0 = pnand %p200_p13, %p194_p10 }
  0x1e   :  { %204 = shalt.err (!%p201_p0)  }
  0x1f   :  { %s241_s23 = smov [#allocation6]  }
  0x20   :  { %25 = dma.vmem_to_smem %s23_s19, 16, %s241_s23, [#allocation3] }
  0x21   :  { %231 = dma.done.wait [#allocation3], 48 }
  0x22   :  { %232 = vsyncadd [#allocation3], 4294967248 }
  0x23   :  { %28 = sfence }
  0x24   :  { %29 = vsyncpa [#allocation9], 0  ;;  %s305_s24 = smov 0  }
  0x25 LB: > { %s50_s2 = sld [smem:[#allocation4 + %s237_s24]]  ;;  %vm74_vm0 = vcmask 253952   ;;  %s73_s14 = scalar_lea.vmem [#allocation2], %s237_s24  ;;  %s237_s24 = sphi %s305_s24, %s48_s24  }
  0x26   : > { %s55_s8 = sld [smem:[#allocation5 + %s237_s24]] }
  0x27   : > { %s60_s25 = sld [smem:[#allocation6 + %s237_s24]]  ;;  %s48_s24 = sadd.s32 1, %s237_s24  }
  0x28   : > { %p45_p7 = scmp.ge.s32.totalorder %s48_s24, 8  }
  0x29   :  { %v149_v6 = vld [vmem:[%s348_s6] ss:$0 sm:$0xff] (%p45_p7)  ;;  %vm94_vm1 = vcmask (%p45_p7), 261120   ;;  %s98_s1 = sld [smem:[#allocation7]] (%p45_p7)  ;;  %v102_v12 = vlaneseq (%p45_p7)  ;;  %vm109_vm2 = vcmask (%p45_p7), 57344  }
  0x2a   :  { %v150_v8 = vld [vmem:[%s349_s7] ss:$0 sm:$0xff] (%p45_p7) }
  0x2b   : > { %p51_p1 = scmp.gt.s32.totalorder %s50_s2, 0  ;;  %p134_p2 = scmp.lt.s32.totalorder %s50_s2, 15  ;;  %v103_v13 = vand.u32 (%p45_p7), 127, %v102_v12  ;;  %v105_v14 = vshrl.u32 (%p45_p7), %v102_v12, 7 }
  0x2c   : > { %p56_p3 = scmp.gt.s32.totalorder %s55_s8, 0  ;;  %p139_p4 = scmp.lt.s32.totalorder %s55_s8, 3 }
  0x2d   : > { %s355_s2 = smov (!%p51_p1, %s50_s2), 0  ;;  %p61_p5 = scmp.gt.s32.totalorder %s60_s25, 0  ;;  %v106_v16 = vsub.s32 (%p45_p7), %v103_v13, %v105_v14 }
  0x2e   : > { %s357_s8 = smov (!%p56_p3, %s55_s8), 0  ;;  %s359_s2 = smov (!%p134_p2, %s355_s2), 15 }
  0x2f   : > { %s361_s8 = smov (!%p139_p4, %s357_s8), 3  ;;  %p144_p6 = scmp.lt.s32.totalorder %s60_s25, 15  ;;  %v99_v15 = vstv (%p45_p7), %s98_s1 }
  0x30   : > { %s65_s28 = scalar_lea.vmem %s345_s3, %s359_s2  ;;  %s67_s10 = scalar_lea.vmem %s346_s4, %s361_s8 }
  0x31   : > { %s363_s25 = smov (!%p61_p5, %s60_s25), 0  ;;  %v66_v0 = vld [vmem:[%s65_s28] sm:$0x1]  ;;  %47 = sbr.rel (!%p45_p7) target bundleno = 37 (0x25), region = 55 }
  0x32   : > { %v68_v1 = vld [vmem:[%s67_s10] sm:$0x1]  ;;  %s365_s25 = smov (!%p144_p6, %s363_s25), 15  ;;  %s242_s3 = smov (%p45_p7), [#allocation8]  }
  0x33   : > { %v69_v2 = vadd.f32 %v68_v1, %v66_v0  ;;  %s70_s13 = scalar_lea.vmem %s347_s5, %s365_s25  ;;  %s117_s4 = sshll.u32 (%p45_p7), %s242_s3, 4  ;;  %s118_s4 = int_to_ptr.vmem [resolvable:$true] %s117_s4 }
  0x34   : > { %v71_v3 = vld [vmem:[%s70_s13] sm:$0x1]  ;;  %s205_s5 = scalar_lea.vmem (%p45_p7), %s118_s4, 16  ;;  %s209_s6 = scalar_lea.vmem (%p45_p7), %s118_s4, 32 }
  0x35   : > { %v72_v4 = vadd.f32 %v71_v3, %v69_v2  ;;  %p206_p8 = scmp.ne.s32.totalorder (%p45_p7), %s118_s4, %s205_s5  ;;  %p210_p9 = scmp.lt.s32.totalorder (%p45_p7), %s118_s4, %s118_s4 }
  0x36   :  { %p211_p10 = scmp.lt.s32.totalorder (%p45_p7), %s209_s6, %s205_s5 }
  0x37   : > { %75 = vst.msk [vmem:[%s73_s14] sm:$0x1] %vm74_vm0, %v72_v4 }
  0x38   :  { %p212_p11 = por %p211_p10, %p210_p9 }
  0x3a   :  { %p213_p12 = pnand %p212_p11, %p206_p8 }
  0x3e   :  { %v76_v5 = vld [vmem:[#allocation2] sm:$0xff] }
  0x3f   :  { %v84_v7 = vadd.f32 %v149_v6, %v76_v5 }
  0x41   :  { %v85_v9 = vmax.f32 %v84_v7, 0.0 }
  0x43   :  { %v93_v10 = vmul.f32 %v150_v8, %v85_v9 }
  0x45   :  { %v95_v11 = vsel %vm94_vm1, %v93_v10, 0.0 }
  0x46   :  { %96 = vadd.xlane.f32.xlu0 %v95_v11 }
  0xd3   :  { %v97_v17 = vpop.xlane.xlu0 %96 }
  0xd4   :  { %v100_v18 = vadd.f32 %v99_v15, %v97_v17 }
  0xd6   :  { %v107_v19 = vrot.slane %v100_v18, %v106_v16 }
  0xd8   :  { %110 = vst.msk [vmem:[#allocation8] sm:$0x1] %vm109_vm2, %v107_v19 }
  0xd9   :  { %216 = shalt.err (!%p213_p12)
}
  0xda   :  { %s217_s19 = scalar_lea.hbm %s350_s9, 16 }
  0xdb   :  { %p218_p13 = scmp.ne.s32.totalorder %s350_s9, %s217_s19  ;;  %p221_p0 = scmp.lt.u32.totalorder %s217_s19, %s350_s9 }
  0xdd   :  { %p223_p1 = pnand %p221_p0, %p218_p13 }
  0xdf   :  { %226 = shalt.err (!%p223_p1)
}
  0xe0   :  { %120 = dma.vmem_to_hbm [thread:$0]  %s118_s4, 16, %s350_s9, [#allocation9]  }
  0xe1   :  { %233 = dma.done.wait [#allocation9], 16  }
  0xe2   :  { %234 = vsyncadd [#allocation9], 4294967280 }
  0xe3   :  { %124 = vsyncpa [#allocation9], 1 }

</bundles_post_ra>
